<compile_context>
chip_gen: v5e
topology: v5e:2x2
jax: 0.10.0
libtpu: 0.0.40
codegen_flags: <defaults>
</compile_context>

<pallas_src>
import functools

import numpy as np
import jax
import jax.numpy as jnp
from jax.experimental import pallas as pl
from jax.experimental.pallas import tpu as pltpu


# ---- static config (DDNLoss.__init__ args), deterministic in-script ----
WEIGHT = 3.0
ALPHA = 0.25
GAMMA = 2.0                      # statically 2.0 -> focal weight lowered to a square
FG_WEIGHT = 13.0
BG_WEIGHT = 1.0
DOWNSAMPLE_FACTOR = 4
DISC_CFG = dict(mode="LID", num_bins=8, depth_min=2.0, depth_max=46.8)
EPS = 1e-8                       # kornia focal loss eps


def _choose_tile_h(B, H, W, C, itemsize, max_tile_bytes=2 << 20):
    """Pick the H-tile height.

    Prefers the full frame (H) when the combined (logits + depth) tile fits
    `max_tile_bytes`; otherwise the largest multiple of 8 dividing H that fits.
    When B == 1, caps the tile at H/2 so a v7x chip still has >= 2 parallel grid
    points to shard across its two TensorCores.
    """
    if H % 8 != 0:
        return H                              # full-extent block (always legal)
    bytes_per_row = (C + 1) * W * itemsize
    max_rows = max(8, int(max_tile_bytes // bytes_per_row))
    th_cap = min(H, (max_rows // 8) * 8)
    if B == 1 and H >= 16:
        th_cap = min(th_cap, max(8, (H // 2 // 8) * 8))
    th_cap = max(th_cap, 8)
    for th in range(th_cap, 7, -8):
        if H % th == 0:
            return th
    return H


def _ddn_loss_kernel(boxes_ref, logits_ref, depth_ref, out_ref, *,
                     num_bins, depth_min, depth_max, gamma, num_boxes):
    b = pl.program_id(0)
    hblk = pl.program_id(1)
    wblk = pl.program_id(2)
    C = logits_ref.shape[0]
    TH, TW = depth_ref.shape

    # ---- transform_utils.bin_depths(..., mode="LID", target=True) ----
    depth = depth_ref[...].astype(jnp.float32)                        # (TH, TW)
    bin_size = 2.0 * (depth_max - depth_min) / (num_bins * (1 + num_bins))
    idx = -0.5 + 0.5 * jnp.sqrt(1.0 + 8.0 * (depth - depth_min) / bin_size)
    finite = jnp.abs(idx) < jnp.float32(jnp.inf)                      # NaN/inf -> False
    bad = (idx < 0.0) | (idx > float(num_bins)) | jnp.logical_not(finite)
    target = jnp.where(bad, float(num_bins), idx).astype(jnp.int32)   # (TH, TW)

    # ---- softmax over classes, evaluated only at the target class ----
    # Two unrolled passes over the (leading) class axis; every temporary is a
    # dense 2-D (sublane x lane) slab.
    m = logits_ref[0].astype(jnp.float32)
    for k in range(1, C):
        m = jnp.maximum(m, logits_ref[k].astype(jnp.float32))
    sum_e = jnp.zeros((TH, TW), jnp.float32)
    e_t = jnp.zeros((TH, TW), jnp.float32)
    for k in range(C):
        ek = jnp.exp(logits_ref[k].astype(jnp.float32) - m)
        sum_e = sum_e + ek
        e_t = e_t + jnp.where(target == k, ek, 0.0)

    inv = pl.reciprocal(sum_e, approx=True)            # EUP slot
    inv = inv * (2.0 - sum_e * inv)                    # one Newton step -> ~f32 exact
    soft_t = e_t * inv + EPS                           # softmax[target] + eps
    one_m = 1.0 - soft_t
    if gamma == 2.0:
        w_focal = one_m * one_m                        # square, no pow
    else:
        w_focal = jnp.power(jnp.maximum(one_m, 0.0), gamma)
    # Unscaled per-pixel focal term (negative); -alpha and the fg/bg weights are
    # applied on the host from the per-tile partial sums.
    loss_raw = w_focal * jnp.log(soft_t)               # (TH, TW)

    # ---- foreground mask from 2-D boxes (scalar-prefetched, flat in SMEM) ----
    rows = hblk * TH + jax.lax.broadcasted_iota(jnp.int32, (TH, TW), 0)
    cols = wblk * TW + jax.lax.broadcasted_iota(jnp.int32, (TH, TW), 1)
    fg = jnp.zeros((TH, TW), dtype=jnp.bool_)
    for n in range(num_boxes):        # small & static -> unrolled SMEM scalar reads
        base = (b * num_boxes + n) * 4
        u1 = boxes_ref[base + 0]
        v1 = boxes_ref[base + 1]
        u2 = boxes_ref[base + 2]
        v2 = boxes_ref[base + 3]
        fg = fg | ((rows >= v1) & (rows < v2) & (cols >= u1) & (cols < u2))

    fg_sum = jnp.sum(jnp.where(fg, loss_raw, 0.0))     # cross-lane/sublane -> XLU
    tot_sum = jnp.sum(loss_raw)

    # Single lane-dense (1, 128) write per tile: [fg_sum, total_sum, 0, ...].
    lane = jax.lax.broadcasted_iota(jnp.int32, (1, 128), 1)
    out_ref[...] = jnp.where(lane == 0, fg_sum,
                             jnp.where(lane == 1, tot_sum, 0.0))


def ddn_loss_forward(depth_logits, depth_maps, gt_boxes2d, tile_h=None):
    """Returns (loss, tb_dict) matching DDNLoss.forward."""
    B, C, H, W = depth_logits.shape
    num_bins = DISC_CFG["num_bins"]
    assert C == num_bins + 1
    N = gt_boxes2d.shape[1]

    itemsize = jnp.dtype(depth_logits.dtype).itemsize
    TH = _choose_tile_h(B, H, W, C, itemsize) if tile_h is None else tile_h
    assert H % TH == 0 and (TH % 8 == 0 or TH == H)
    TW = W                              # full-extent W (always a legal block dim)
    NH = H // TH
    NW = 1
    num_blocks = NH * NW

    # compute_fg_mask box preprocessing (glue): scale, floor mins, ceil maxs, int,
    # flatten to 1-D so the SMEM prefetch buffer has no (8,128) padding blowup.
    boxes = gt_boxes2d.astype(jnp.float32) / DOWNSAMPLE_FACTOR
    lo = jnp.floor(boxes[..., :2])
    hi = jnp.ceil(boxes[..., 2:])
    boxes_flat = jnp.concatenate([lo, hi], axis=-1).astype(jnp.int32).reshape(-1)

    kernel = functools.partial(
        _ddn_loss_kernel,
        num_bins=num_bins,
        depth_min=float(DISC_CFG["depth_min"]),
        depth_max=float(DISC_CFG["depth_max"]),
        gamma=GAMMA,
        num_boxes=N)

    # Right-size the VMEM limit from the real footprint: double-buffered input
    # tiles + a generous allowance for the in-kernel f32 2-D temporaries.
    pix = TH * TW
    tile_in_bytes = (C + 1) * pix * itemsize
    scratch_est = 12 * pix * 4
    vmem_limit = int(min(max(2 * tile_in_bytes + scratch_est + (1 << 20),
                             16 << 20), 32 << 20))

    partials = pl.pallas_call(
        kernel,
        out_shape=jax.ShapeDtypeStruct((B * num_blocks, 1, 128), jnp.float32),
        grid_spec=pltpu.PrefetchScalarGridSpec(
            num_scalar_prefetch=1,
            grid=(B, NH, NW),
            in_specs=[
                pl.BlockSpec((None, C, TH, TW),
                             lambda b, hi, wi, _boxes: (b, 0, hi, wi)),
                pl.BlockSpec((None, TH, TW),
                             lambda b, hi, wi, _boxes: (b, hi, wi)),
            ],
            out_specs=pl.BlockSpec(
                (None, 1, 128),
                lambda b, hi, wi, _boxes: (b * num_blocks + hi * NW + wi, 0, 0)),
        ),
        compiler_params=pltpu.CompilerParams(
            dimension_semantics=("parallel", "parallel", "parallel"),
            vmem_limit_bytes=vmem_limit),
    )(boxes_flat, depth_logits, depth_maps)

    # Host-side finalize: apply -alpha, fg/bg weights, normalization and weight.
    fg_raw = partials[:, 0, 0].sum()
    tot_raw = partials[:, 0, 1].sum()
    bg_raw = tot_raw - fg_raw
    num_pixels = jnp.float32(B * H * W)              # fg_mask.sum() + bg_mask.sum()
    fg_loss = (-ALPHA * FG_WEIGHT) * fg_raw / num_pixels
    bg_loss = (-ALPHA * BG_WEIGHT) * bg_raw / num_pixels
    balancer_loss = fg_loss + bg_loss
    loss = balancer_loss * WEIGHT
    # TODO(synk): torch's tb_dict uses .item(); we return JAX scalars so this stays
    # jit-safe — convert with float()/.item() outside of jit if logging.
    tb_dict = {"balancer_loss": balancer_loss, "fg_loss": fg_loss,
               "bg_loss": bg_loss, "ddn_loss": loss}
    return loss, tb_dict


def ddn_loss_reference(depth_logits, depth_maps, gt_boxes2d):
    """Pure-JAX reference mirroring the PyTorch module, for validation."""
    B, C, H, W = depth_logits.shape
    nb = DISC_CFG["num_bins"]
    dmin, dmax = DISC_CFG["depth_min"], DISC_CFG["depth_max"]

    bin_size = 2.0 * (dmax - dmin) / (nb * (1 + nb))
    idx = -0.5 + 0.5 * jnp.sqrt(1.0 + 8.0 * (depth_maps - dmin) / bin_size)
    finite = jnp.abs(idx) < jnp.float32(jnp.inf)
    bad = (idx < 0.0) | (idx > float(nb)) | jnp.logical_not(finite)
    tgt = jnp.where(bad, float(nb), idx).astype(jnp.int32)

    soft = jax.nn.softmax(depth_logits, axis=1) + EPS
    focal = -ALPHA * jnp.power(jnp.maximum(1.0 - soft, 0.0), GAMMA) * jnp.log(soft)
    onehot = jax.nn.one_hot(tgt, C, axis=1, dtype=jnp.float32)
    loss_px = jnp.sum(onehot * focal, axis=1)                         # (B, H, W)

    boxes = gt_boxes2d / DOWNSAMPLE_FACTOR
    u1 = jnp.floor(boxes[..., 0]).astype(jnp.int32)[..., None, None]
    v1 = jnp.floor(boxes[..., 1]).astype(jnp.int32)[..., None, None]
    u2 = jnp.ceil(boxes[..., 2]).astype(jnp.int32)[..., None, None]
    v2 = jnp.ceil(boxes[..., 3]).astype(jnp.int32)[..., None, None]
    r = jnp.arange(H)[None, None, :, None]
    c = jnp.arange(W)[None, None, None, :]
    fg = jnp.any((r >= v1) & (r < v2) & (c >= u1) & (c < u2), axis=1)  # (B, H, W)

    fg_f = fg.astype(jnp.float32)
    weights = FG_WEIGHT * fg_f + BG_WEIGHT * (1.0 - fg_f)
    wloss = loss_px * weights
    num_pixels = jnp.float32(B * H * W)
    fg_loss = jnp.sum(wloss * fg_f) / num_pixels
    bg_loss = jnp.sum(wloss * (1.0 - fg_f)) / num_pixels
    return (fg_loss + bg_loss) * WEIGHT


if __name__ == "__main__":
    key = jax.random.PRNGKey(0)
    B, H, W = 2, 16, 16
    C = DISC_CFG["num_bins"] + 1
    N = 3

    k1, k2 = jax.random.split(key)
    depth_logits = jax.random.normal(k1, (B, C, H, W), dtype=jnp.float32)
    depth_maps = jax.random.uniform(k2, (B, H, W), dtype=jnp.float32,
                                    minval=0.0, maxval=50.0)
    # (u1, v1, u2, v2) boxes in full-resolution image coords (H*df x W*df);
    # the all-zero row is a padding box (produces no foreground pixels).
    gt_boxes2d = jnp.array(
        [[[4.0, 8.0, 40.0, 36.0], [20.0, 12.0, 60.0, 50.0], [0.0, 0.0, 0.0, 0.0]],
         [[0.0, 0.0, 24.0, 24.0], [30.0, 30.0, 62.0, 62.0], [0.0, 0.0, 0.0, 0.0]]],
        dtype=jnp.float32)

    # f32 path; tile_h=8 -> 2 H-tiles per batch, exercising the multi-tile
    # all-parallel grid and the per-tile partial-sum outputs.
    loss, tb_dict = ddn_loss_forward(depth_logits, depth_maps, gt_boxes2d, tile_h=8)
    loss = jax.block_until_ready(loss)
    ref_loss = jax.block_until_ready(
        ddn_loss_reference(depth_logits, depth_maps, gt_boxes2d))
    np.testing.assert_allclose(float(loss), float(ref_loss), rtol=3e-4, atol=1e-6)

    # bf16-in-HBM input policy (recommended for v5e/v6e bandwidth): cast inputs
    # to bf16 and compare against the reference evaluated on the same values.
    logits_bf16 = depth_logits.astype(jnp.bfloat16)
    depth_bf16 = depth_maps.astype(jnp.bfloat16)
    loss_bf, _ = ddn_loss_forward(logits_bf16, depth_bf16, gt_boxes2d)
    loss_bf = jax.block_until_ready(loss_bf)
    ref_bf = jax.block_until_ready(
        ddn_loss_reference(logits_bf16.astype(jnp.float32),
                           depth_bf16.astype(jnp.float32), gt_boxes2d))
    np.testing.assert_allclose(float(loss_bf), float(ref_bf), rtol=3e-4, atol=1e-6)

    print("KERNEL_OK")
</pallas_src>

<mosaic_0001>
module attributes {stable_mosaic.version = 11 : i64} {
  func.func @_ddn_loss_kernel(%arg0: i32, %arg1: i32, %arg2: i32, %arg3: memref<24xi32, #tpu.memory_space<smem>>, %arg4: memref<1x9x8x16xf32, #tpu.memory_space<vmem>>, %arg5: memref<1x8x16xf32, #tpu.memory_space<vmem>>, %arg6: memref<1x1x128xf32, #tpu.memory_space<vmem>>) attributes {dimension_semantics = [#tpu.dimension_semantics<parallel>, #tpu.dimension_semantics<parallel>, #tpu.dimension_semantics<parallel>], iteration_bounds = array<i64: 2, 2, 1>, scalar_prefetch = 1 : i64, scratch_operands = 0 : i64, tpu.core_type = #tpu.core_type<tc>, window_params = [{transform_indices = @transform_0, window_bounds = array<i64: 1, 9, 8, 16>}, {transform_indices = @transform_1, window_bounds = array<i64: 1, 8, 16>}, {transform_indices = @transform_2, window_bounds = array<i64: 1, 1, 128>}]} {
    %c0 = arith.constant 0 : index
    %c0_0 = arith.constant 0 : index
    %c0_1 = arith.constant 0 : index
    %0 = vector.load %arg5[%c0, %c0_0, %c0_1] : memref<1x8x16xf32, #tpu.memory_space<vmem>>, vector<1x8x16xf32>
    %1 = vector.shape_cast %0 : vector<1x8x16xf32> to vector<8x16xf32>
    %cst = arith.constant 2.000000e+00 : f32
    %2 = vector.broadcast %cst : f32 to vector<8x16xf32>
    %3 = arith.subf %1, %2 : vector<8x16xf32>
    %cst_2 = arith.constant 8.000000e+00 : f32
    %4 = vector.broadcast %cst_2 : f32 to vector<8x16xf32>
    %5 = arith.mulf %4, %3 : vector<8x16xf32>
    %cst_3 = arith.constant 1.24444449 : f32
    %6 = vector.broadcast %cst_3 : f32 to vector<8x16xf32>
    %7 = arith.divf %5, %6 : vector<8x16xf32>
    %cst_4 = arith.constant 1.000000e+00 : f32
    %8 = vector.broadcast %cst_4 : f32 to vector<8x16xf32>
    %9 = arith.addf %8, %7 : vector<8x16xf32>
    %10 = math.sqrt %9 : vector<8x16xf32>
    %cst_5 = arith.constant 5.000000e-01 : f32
    %11 = vector.broadcast %cst_5 : f32 to vector<8x16xf32>
    %12 = arith.mulf %11, %10 : vector<8x16xf32>
    %cst_6 = arith.constant -5.000000e-01 : f32
    %13 = vector.broadcast %cst_6 : f32 to vector<8x16xf32>
    %14 = arith.addf %13, %12 : vector<8x16xf32>
    %15 = math.absf %14 : vector<8x16xf32>
    %cst_7 = arith.constant 0x7F800000 : f32
    %16 = vector.broadcast %cst_7 : f32 to vector<8x16xf32>
    %17 = arith.cmpf olt, %15, %16 : vector<8x16xf32>
    %cst_8 = arith.constant 0.000000e+00 : f32
    %18 = vector.broadcast %cst_8 : f32 to vector<8x16xf32>
    %19 = arith.cmpf olt, %14, %18 : vector<8x16xf32>
    %cst_9 = arith.constant 8.000000e+00 : f32
    %20 = vector.broadcast %cst_9 : f32 to vector<8x16xf32>
    %21 = arith.cmpf ogt, %14, %20 : vector<8x16xf32>
    %22 = arith.ori %19, %21 : vector<8x16xi1>
    %cst_10 = arith.constant dense<true> : vector<8x16xi1>
    %23 = arith.xori %17, %cst_10 : vector<8x16xi1>
    %24 = arith.ori %22, %23 : vector<8x16xi1>
    %cst_11 = arith.constant 8.000000e+00 : f32
    %25 = vector.broadcast %cst_11 : f32 to vector<8x16xf32>
    %26 = arith.select %24, %25, %14 : vector<8x16xi1>, vector<8x16xf32>
    %27 = arith.fptosi %26 : vector<8x16xf32> to vector<8x16xi32>
    %c0_12 = arith.constant 0 : index
    %c0_13 = arith.constant 0 : index
    %c0_14 = arith.constant 0 : index
    %c0_15 = arith.constant 0 : index
    %28 = vector.load %arg4[%c0_12, %c0_13, %c0_14, %c0_15] : memref<1x9x8x16xf32, #tpu.memory_space<vmem>>, vector<1x1x8x16xf32>
    %29 = vector.shape_cast %28 : vector<1x1x8x16xf32> to vector<8x16xf32>
    %c0_16 = arith.constant 0 : index
    %c1 = arith.constant 1 : index
    %c0_17 = arith.constant 0 : index
    %c0_18 = arith.constant 0 : index
    %30 = vector.load %arg4[%c0_16, %c1, %c0_17, %c0_18] : memref<1x9x8x16xf32, #tpu.memory_space<vmem>>, vector<1x1x8x16xf32>
    %31 = vector.shape_cast %30 : vector<1x1x8x16xf32> to vector<8x16xf32>
    %32 = arith.maximumf %29, %31 : vector<8x16xf32>
    %c0_19 = arith.constant 0 : index
    %c2 = arith.constant 2 : index
    %c0_20 = arith.constant 0 : index
    %c0_21 = arith.constant 0 : index
    %33 = vector.load %arg4[%c0_19, %c2, %c0_20, %c0_21] : memref<1x9x8x16xf32, #tpu.memory_space<vmem>>, vector<1x1x8x16xf32>
    %34 = vector.shape_cast %33 : vector<1x1x8x16xf32> to vector<8x16xf32>
    %35 = arith.maximumf %32, %34 : vector<8x16xf32>
    %c0_22 = arith.constant 0 : index
    %c3 = arith.constant 3 : index
    %c0_23 = arith.constant 0 : index
    %c0_24 = arith.constant 0 : index
    %36 = vector.load %arg4[%c0_22, %c3, %c0_23, %c0_24] : memref<1x9x8x16xf32, #tpu.memory_space<vmem>>, vector<1x1x8x16xf32>
    %37 = vector.shape_cast %36 : vector<1x1x8x16xf32> to vector<8x16xf32>
    %38 = arith.maximumf %35, %37 : vector<8x16xf32>
    %c0_25 = arith.constant 0 : index
    %c4 = arith.constant 4 : index
    %c0_26 = arith.constant 0 : index
    %c0_27 = arith.constant 0 : index
    %39 = vector.load %arg4[%c0_25, %c4, %c0_26, %c0_27] : memref<1x9x8x16xf32, #tpu.memory_space<vmem>>, vector<1x1x8x16xf32>
    %40 = vector.shape_cast %39 : vector<1x1x8x16xf32> to vector<8x16xf32>
    %41 = arith.maximumf %38, %40 : vector<8x16xf32>
    %c0_28 = arith.constant 0 : index
    %c5 = arith.constant 5 : index
    %c0_29 = arith.constant 0 : index
    %c0_30 = arith.constant 0 : index
    %42 = vector.load %arg4[%c0_28, %c5, %c0_29, %c0_30] : memref<1x9x8x16xf32, #tpu.memory_space<vmem>>, vector<1x1x8x16xf32>
    %43 = vector.shape_cast %42 : vector<1x1x8x16xf32> to vector<8x16xf32>
    %44 = arith.maximumf %41, %43 : vector<8x16xf32>
    %c0_31 = arith.constant 0 : index
    %c6 = arith.constant 6 : index
    %c0_32 = arith.constant 0 : index
    %c0_33 = arith.constant 0 : index
    %45 = vector.load %arg4[%c0_31, %c6, %c0_32, %c0_33] : memref<1x9x8x16xf32, #tpu.memory_space<vmem>>, vector<1x1x8x16xf32>
    %46 = vector.shape_cast %45 : vector<1x1x8x16xf32> to vector<8x16xf32>
    %47 = arith.maximumf %44, %46 : vector<8x16xf32>
    %c0_34 = arith.constant 0 : index
    %c7 = arith.constant 7 : index
    %c0_35 = arith.constant 0 : index
    %c0_36 = arith.constant 0 : index
    %48 = vector.load %arg4[%c0_34, %c7, %c0_35, %c0_36] : memref<1x9x8x16xf32, #tpu.memory_space<vmem>>, vector<1x1x8x16xf32>
    %49 = vector.shape_cast %48 : vector<1x1x8x16xf32> to vector<8x16xf32>
    %50 = arith.maximumf %47, %49 : vector<8x16xf32>
    %c0_37 = arith.constant 0 : index
    %c8 = arith.constant 8 : index
    %c0_38 = arith.constant 0 : index
    %c0_39 = arith.constant 0 : index
    %51 = vector.load %arg4[%c0_37, %c8, %c0_38, %c0_39] : memref<1x9x8x16xf32, #tpu.memory_space<vmem>>, vector<1x1x8x16xf32>
    %52 = vector.shape_cast %51 : vector<1x1x8x16xf32> to vector<8x16xf32>
    %53 = arith.maximumf %50, %52 : vector<8x16xf32>
    %cst_40 = arith.constant 0.000000e+00 : f32
    %54 = vector.broadcast %cst_40 : f32 to vector<8x16xf32>
    %cst_41 = arith.constant 0.000000e+00 : f32
    %55 = vector.broadcast %cst_41 : f32 to vector<8x16xf32>
    %c0_42 = arith.constant 0 : index
    %c0_43 = arith.constant 0 : index
    %c0_44 = arith.constant 0 : index
    %c0_45 = arith.constant 0 : index
    %56 = vector.load %arg4[%c0_42, %c0_43, %c0_44, %c0_45] : memref<1x9x8x16xf32, #tpu.memory_space<vmem>>, vector<1x1x8x16xf32>
    %57 = vector.shape_cast %56 : vector<1x1x8x16xf32> to vector<8x16xf32>
    %58 = arith.subf %57, %53 : vector<8x16xf32>
    %59 = math.exp %58 : vector<8x16xf32>
    %60 = arith.addf %54, %59 : vector<8x16xf32>
    %c0_i32 = arith.constant 0 : i32
    %61 = vector.broadcast %c0_i32 : i32 to vector<8x16xi32>
    %62 = arith.cmpi eq, %27, %61 : vector<8x16xi32>
    %cst_46 = arith.constant 0.000000e+00 : f32
    %63 = vector.broadcast %cst_46 : f32 to vector<8x16xf32>
    %64 = arith.select %62, %59, %63 : vector<8x16xi1>, vector<8x16xf32>
    %65 = arith.addf %55, %64 : vector<8x16xf32>
    %c0_47 = arith.constant 0 : index
    %c1_48 = arith.constant 1 : index
    %c0_49 = arith.constant 0 : index
    %c0_50 = arith.constant 0 : index
    %66 = vector.load %arg4[%c0_47, %c1_48, %c0_49, %c0_50] : memref<1x9x8x16xf32, #tpu.memory_space<vmem>>, vector<1x1x8x16xf32>
    %67 = vector.shape_cast %66 : vector<1x1x8x16xf32> to vector<8x16xf32>
    %68 = arith.subf %67, %53 : vector<8x16xf32>
    %69 = math.exp %68 : vector<8x16xf32>
    %70 = arith.addf %60, %69 : vector<8x16xf32>
    %c1_i32 = arith.constant 1 : i32
    %71 = vector.broadcast %c1_i32 : i32 to vector<8x16xi32>
    %72 = arith.cmpi eq, %27, %71 : vector<8x16xi32>
    %cst_51 = arith.constant 0.000000e+00 : f32
    %73 = vector.broadcast %cst_51 : f32 to vector<8x16xf32>
    %74 = arith.select %72, %69, %73 : vector<8x16xi1>, vector<8x16xf32>
    %75 = arith.addf %65, %74 : vector<8x16xf32>
    %c0_52 = arith.constant 0 : index
    %c2_53 = arith.constant 2 : index
    %c0_54 = arith.constant 0 : index
    %c0_55 = arith.constant 0 : index
    %76 = vector.load %arg4[%c0_52, %c2_53, %c0_54, %c0_55] : memref<1x9x8x16xf32, #tpu.memory_space<vmem>>, vector<1x1x8x16xf32>
    %77 = vector.shape_cast %76 : vector<1x1x8x16xf32> to vector<8x16xf32>
    %78 = arith.subf %77, %53 : vector<8x16xf32>
    %79 = math.exp %78 : vector<8x16xf32>
    %80 = arith.addf %70, %79 : vector<8x16xf32>
    %c2_i32 = arith.constant 2 : i32
    %81 = vector.broadcast %c2_i32 : i32 to vector<8x16xi32>
    %82 = arith.cmpi eq, %27, %81 : vector<8x16xi32>
    %cst_56 = arith.constant 0.000000e+00 : f32
    %83 = vector.broadcast %cst_56 : f32 to vector<8x16xf32>
    %84 = arith.select %82, %79, %83 : vector<8x16xi1>, vector<8x16xf32>
    %85 = arith.addf %75, %84 : vector<8x16xf32>
    %c0_57 = arith.constant 0 : index
    %c3_58 = arith.constant 3 : index
    %c0_59 = arith.constant 0 : index
    %c0_60 = arith.constant 0 : index
    %86 = vector.load %arg4[%c0_57, %c3_58, %c0_59, %c0_60] : memref<1x9x8x16xf32, #tpu.memory_space<vmem>>, vector<1x1x8x16xf32>
    %87 = vector.shape_cast %86 : vector<1x1x8x16xf32> to vector<8x16xf32>
    %88 = arith.subf %87, %53 : vector<8x16xf32>
    %89 = math.exp %88 : vector<8x16xf32>
    %90 = arith.addf %80, %89 : vector<8x16xf32>
    %c3_i32 = arith.constant 3 : i32
    %91 = vector.broadcast %c3_i32 : i32 to vector<8x16xi32>
    %92 = arith.cmpi eq, %27, %91 : vector<8x16xi32>
    %cst_61 = arith.constant 0.000000e+00 : f32
    %93 = vector.broadcast %cst_61 : f32 to vector<8x16xf32>
    %94 = arith.select %92, %89, %93 : vector<8x16xi1>, vector<8x16xf32>
    %95 = arith.addf %85, %94 : vector<8x16xf32>
    %c0_62 = arith.constant 0 : index
    %c4_63 = arith.constant 4 : index
    %c0_64 = arith.constant 0 : index
    %c0_65 = arith.constant 0 : index
    %96 = vector.load %arg4[%c0_62, %c4_63, %c0_64, %c0_65] : memref<1x9x8x16xf32, #tpu.memory_space<vmem>>, vector<1x1x8x16xf32>
    %97 = vector.shape_cast %96 : vector<1x1x8x16xf32> to vector<8x16xf32>
    %98 = arith.subf %97, %53 : vector<8x16xf32>
    %99 = math.exp %98 : vector<8x16xf32>
    %100 = arith.addf %90, %99 : vector<8x16xf32>
    %c4_i32 = arith.constant 4 : i32
    %101 = vector.broadcast %c4_i32 : i32 to vector<8x16xi32>
    %102 = arith.cmpi eq, %27, %101 : vector<8x16xi32>
    %cst_66 = arith.constant 0.000000e+00 : f32
    %103 = vector.broadcast %cst_66 : f32 to vector<8x16xf32>
    %104 = arith.select %102, %99, %103 : vector<8x16xi1>, vector<8x16xf32>
    %105 = arith.addf %95, %104 : vector<8x16xf32>
    %c0_67 = arith.constant 0 : index
    %c5_68 = arith.constant 5 : index
    %c0_69 = arith.constant 0 : index
    %c0_70 = arith.constant 0 : index
    %106 = vector.load %arg4[%c0_67, %c5_68, %c0_69, %c0_70] : memref<1x9x8x16xf32, #tpu.memory_space<vmem>>, vector<1x1x8x16xf32>
    %107 = vector.shape_cast %106 : vector<1x1x8x16xf32> to vector<8x16xf32>
    %108 = arith.subf %107, %53 : vector<8x16xf32>
    %109 = math.exp %108 : vector<8x16xf32>
    %110 = arith.addf %100, %109 : vector<8x16xf32>
    %c5_i32 = arith.constant 5 : i32
    %111 = vector.broadcast %c5_i32 : i32 to vector<8x16xi32>
    %112 = arith.cmpi eq, %27, %111 : vector<8x16xi32>
    %cst_71 = arith.constant 0.000000e+00 : f32
    %113 = vector.broadcast %cst_71 : f32 to vector<8x16xf32>
    %114 = arith.select %112, %109, %113 : vector<8x16xi1>, vector<8x16xf32>
    %115 = arith.addf %105, %114 : vector<8x16xf32>
    %c0_72 = arith.constant 0 : index
    %c6_73 = arith.constant 6 : index
    %c0_74 = arith.constant 0 : index
    %c0_75 = arith.constant 0 : index
    %116 = vector.load %arg4[%c0_72, %c6_73, %c0_74, %c0_75] : memref<1x9x8x16xf32, #tpu.memory_space<vmem>>, vector<1x1x8x16xf32>
    %117 = vector.shape_cast %116 : vector<1x1x8x16xf32> to vector<8x16xf32>
    %118 = arith.subf %117, %53 : vector<8x16xf32>
    %119 = math.exp %118 : vector<8x16xf32>
    %120 = arith.addf %110, %119 : vector<8x16xf32>
    %c6_i32 = arith.constant 6 : i32
    %121 = vector.broadcast %c6_i32 : i32 to vector<8x16xi32>
    %122 = arith.cmpi eq, %27, %121 : vector<8x16xi32>
    %cst_76 = arith.constant 0.000000e+00 : f32
    %123 = vector.broadcast %cst_76 : f32 to vector<8x16xf32>
    %124 = arith.select %122, %119, %123 : vector<8x16xi1>, vector<8x16xf32>
    %125 = arith.addf %115, %124 : vector<8x16xf32>
    %c0_77 = arith.constant 0 : index
    %c7_78 = arith.constant 7 : index
    %c0_79 = arith.constant 0 : index
    %c0_80 = arith.constant 0 : index
    %126 = vector.load %arg4[%c0_77, %c7_78, %c0_79, %c0_80] : memref<1x9x8x16xf32, #tpu.memory_space<vmem>>, vector<1x1x8x16xf32>
    %127 = vector.shape_cast %126 : vector<1x1x8x16xf32> to vector<8x16xf32>
    %128 = arith.subf %127, %53 : vector<8x16xf32>
    %129 = math.exp %128 : vector<8x16xf32>
    %130 = arith.addf %120, %129 : vector<8x16xf32>
    %c7_i32 = arith.constant 7 : i32
    %131 = vector.broadcast %c7_i32 : i32 to vector<8x16xi32>
    %132 = arith.cmpi eq, %27, %131 : vector<8x16xi32>
    %cst_81 = arith.constant 0.000000e+00 : f32
    %133 = vector.broadcast %cst_81 : f32 to vector<8x16xf32>
    %134 = arith.select %132, %129, %133 : vector<8x16xi1>, vector<8x16xf32>
    %135 = arith.addf %125, %134 : vector<8x16xf32>
    %c0_82 = arith.constant 0 : index
    %c8_83 = arith.constant 8 : index
    %c0_84 = arith.constant 0 : index
    %c0_85 = arith.constant 0 : index
    %136 = vector.load %arg4[%c0_82, %c8_83, %c0_84, %c0_85] : memref<1x9x8x16xf32, #tpu.memory_space<vmem>>, vector<1x1x8x16xf32>
    %137 = vector.shape_cast %136 : vector<1x1x8x16xf32> to vector<8x16xf32>
    %138 = arith.subf %137, %53 : vector<8x16xf32>
    %139 = math.exp %138 : vector<8x16xf32>
    %140 = arith.addf %130, %139 : vector<8x16xf32>
    %c8_i32 = arith.constant 8 : i32
    %141 = vector.broadcast %c8_i32 : i32 to vector<8x16xi32>
    %142 = arith.cmpi eq, %27, %141 : vector<8x16xi32>
    %cst_86 = arith.constant 0.000000e+00 : f32
    %143 = vector.broadcast %cst_86 : f32 to vector<8x16xf32>
    %144 = arith.select %142, %139, %143 : vector<8x16xi1>, vector<8x16xf32>
    %145 = arith.addf %135, %144 : vector<8x16xf32>
    %146 = tpu.reciprocal %140 {approx = true} : vector<8x16xf32> -> vector<8x16xf32>
    %147 = arith.mulf %140, %146 : vector<8x16xf32>
    %cst_87 = arith.constant 2.000000e+00 : f32
    %148 = vector.broadcast %cst_87 : f32 to vector<8x16xf32>
    %149 = arith.subf %148, %147 : vector<8x16xf32>
    %150 = arith.mulf %146, %149 : vector<8x16xf32>
    %151 = arith.mulf %145, %150 : vector<8x16xf32>
    %cst_88 = arith.constant 9.99999993E-9 : f32
    %152 = vector.broadcast %cst_88 : f32 to vector<8x16xf32>
    %153 = arith.addf %151, %152 : vector<8x16xf32>
    %cst_89 = arith.constant 1.000000e+00 : f32
    %154 = vector.broadcast %cst_89 : f32 to vector<8x16xf32>
    %155 = arith.subf %154, %153 : vector<8x16xf32>
    %156 = arith.mulf %155, %155 : vector<8x16xf32>
    %157 = math.log %153 : vector<8x16xf32>
    %158 = arith.mulf %156, %157 : vector<8x16xf32>
    %c8_i32_90 = arith.constant 8 : i32
    %159 = arith.muli %arg1, %c8_i32_90 : i32
    %160 = tpu.iota {dimensions = array<i32: 0>} : vector<8x16xi32>
    %161 = vector.broadcast %159 : i32 to vector<8x16xi32>
    %162 = arith.addi %161, %160 : vector<8x16xi32>
    %c16_i32 = arith.constant 16 : i32
    %163 = arith.muli %arg2, %c16_i32 : i32
    %164 = tpu.iota {dimensions = array<i32: 1>} : vector<8x16xi32>
    %165 = vector.broadcast %163 : i32 to vector<8x16xi32>
    %166 = arith.addi %165, %164 : vector<8x16xi32>
    %false = arith.constant false
    %167 = vector.broadcast %false : i1 to vector<8x16xi1>
    %c3_i32_91 = arith.constant 3 : i32
    %168 = arith.muli %arg0, %c3_i32_91 : i32
    %c0_i32_92 = arith.constant 0 : i32
    %169 = arith.addi %168, %c0_i32_92 : i32
    %c4_i32_93 = arith.constant 4 : i32
    %170 = arith.muli %169, %c4_i32_93 : i32
    %c0_i32_94 = arith.constant 0 : i32
    %171 = arith.addi %170, %c0_i32_94 : i32
    %172 = arith.index_cast %171 : i32 to index
    %173 = memref.load %arg3[%172] : memref<24xi32, #tpu.memory_space<smem>>
    %c1_i32_95 = arith.constant 1 : i32
    %174 = arith.addi %170, %c1_i32_95 : i32
    %175 = arith.index_cast %174 : i32 to index
    %176 = memref.load %arg3[%175] : memref<24xi32, #tpu.memory_space<smem>>
    %c2_i32_96 = arith.constant 2 : i32
    %177 = arith.addi %170, %c2_i32_96 : i32
    %178 = arith.index_cast %177 : i32 to index
    %179 = memref.load %arg3[%178] : memref<24xi32, #tpu.memory_space<smem>>
    %c3_i32_97 = arith.constant 3 : i32
    %180 = arith.addi %170, %c3_i32_97 : i32
    %181 = arith.index_cast %180 : i32 to index
    %182 = memref.load %arg3[%181] : memref<24xi32, #tpu.memory_space<smem>>
    %183 = vector.broadcast %176 : i32 to vector<8x16xi32>
    %184 = arith.cmpi sge, %162, %183 : vector<8x16xi32>
    %185 = vector.broadcast %182 : i32 to vector<8x16xi32>
    %186 = arith.cmpi slt, %162, %185 : vector<8x16xi32>
    %187 = arith.andi %184, %186 : vector<8x16xi1>
    %188 = vector.broadcast %173 : i32 to vector<8x16xi32>
    %189 = arith.cmpi sge, %166, %188 : vector<8x16xi32>
    %190 = arith.andi %187, %189 : vector<8x16xi1>
    %191 = vector.broadcast %179 : i32 to vector<8x16xi32>
    %192 = arith.cmpi slt, %166, %191 : vector<8x16xi32>
    %193 = arith.andi %190, %192 : vector<8x16xi1>
    %194 = arith.ori %167, %193 : vector<8x16xi1>
    %c3_i32_98 = arith.constant 3 : i32
    %195 = arith.muli %arg0, %c3_i32_98 : i32
    %c1_i32_99 = arith.constant 1 : i32
    %196 = arith.addi %195, %c1_i32_99 : i32
    %c4_i32_100 = arith.constant 4 : i32
    %197 = arith.muli %196, %c4_i32_100 : i32
    %c0_i32_101 = arith.constant 0 : i32
    %198 = arith.addi %197, %c0_i32_101 : i32
    %199 = arith.index_cast %198 : i32 to index
    %200 = memref.load %arg3[%199] : memref<24xi32, #tpu.memory_space<smem>>
    %c1_i32_102 = arith.constant 1 : i32
    %201 = arith.addi %197, %c1_i32_102 : i32
    %202 = arith.index_cast %201 : i32 to index
    %203 = memref.load %arg3[%202] : memref<24xi32, #tpu.memory_space<smem>>
    %c2_i32_103 = arith.constant 2 : i32
    %204 = arith.addi %197, %c2_i32_103 : i32
    %205 = arith.index_cast %204 : i32 to index
    %206 = memref.load %arg3[%205] : memref<24xi32, #tpu.memory_space<smem>>
    %c3_i32_104 = arith.constant 3 : i32
    %207 = arith.addi %197, %c3_i32_104 : i32
    %208 = arith.index_cast %207 : i32 to index
    %209 = memref.load %arg3[%208] : memref<24xi32, #tpu.memory_space<smem>>
    %210 = vector.broadcast %203 : i32 to vector<8x16xi32>
    %211 = arith.cmpi sge, %162, %210 : vector<8x16xi32>
    %212 = vector.broadcast %209 : i32 to vector<8x16xi32>
    %213 = arith.cmpi slt, %162, %212 : vector<8x16xi32>
    %214 = arith.andi %211, %213 : vector<8x16xi1>
    %215 = vector.broadcast %200 : i32 to vector<8x16xi32>
    %216 = arith.cmpi sge, %166, %215 : vector<8x16xi32>
    %217 = arith.andi %214, %216 : vector<8x16xi1>
    %218 = vector.broadcast %206 : i32 to vector<8x16xi32>
    %219 = arith.cmpi slt, %166, %218 : vector<8x16xi32>
    %220 = arith.andi %217, %219 : vector<8x16xi1>
    %221 = arith.ori %194, %220 : vector<8x16xi1>
    %c3_i32_105 = arith.constant 3 : i32
    %222 = arith.muli %arg0, %c3_i32_105 : i32
    %c2_i32_106 = arith.constant 2 : i32
    %223 = arith.addi %222, %c2_i32_106 : i32
    %c4_i32_107 = arith.constant 4 : i32
    %224 = arith.muli %223, %c4_i32_107 : i32
    %c0_i32_108 = arith.constant 0 : i32
    %225 = arith.addi %224, %c0_i32_108 : i32
    %226 = arith.index_cast %225 : i32 to index
    %227 = memref.load %arg3[%226] : memref<24xi32, #tpu.memory_space<smem>>
    %c1_i32_109 = arith.constant 1 : i32
    %228 = arith.addi %224, %c1_i32_109 : i32
    %229 = arith.index_cast %228 : i32 to index
    %230 = memref.load %arg3[%229] : memref<24xi32, #tpu.memory_space<smem>>
    %c2_i32_110 = arith.constant 2 : i32
    %231 = arith.addi %224, %c2_i32_110 : i32
    %232 = arith.index_cast %231 : i32 to index
    %233 = memref.load %arg3[%232] : memref<24xi32, #tpu.memory_space<smem>>
    %c3_i32_111 = arith.constant 3 : i32
    %234 = arith.addi %224, %c3_i32_111 : i32
    %235 = arith.index_cast %234 : i32 to index
    %236 = memref.load %arg3[%235] : memref<24xi32, #tpu.memory_space<smem>>
    %237 = vector.broadcast %230 : i32 to vector<8x16xi32>
    %238 = arith.cmpi sge, %162, %237 : vector<8x16xi32>
    %239 = vector.broadcast %236 : i32 to vector<8x16xi32>
    %240 = arith.cmpi slt, %162, %239 : vector<8x16xi32>
    %241 = arith.andi %238, %240 : vector<8x16xi1>
    %242 = vector.broadcast %227 : i32 to vector<8x16xi32>
    %243 = arith.cmpi sge, %166, %242 : vector<8x16xi32>
    %244 = arith.andi %241, %243 : vector<8x16xi1>
    %245 = vector.broadcast %233 : i32 to vector<8x16xi32>
    %246 = arith.cmpi slt, %166, %245 : vector<8x16xi32>
    %247 = arith.andi %244, %246 : vector<8x16xi1>
    %248 = arith.ori %221, %247 : vector<8x16xi1>
    %cst_112 = arith.constant 0.000000e+00 : f32
    %249 = vector.broadcast %cst_112 : f32 to vector<8x16xf32>
    %250 = arith.select %248, %158, %249 : vector<8x16xi1>, vector<8x16xf32>
    %251 = vector.shape_cast %250 : vector<8x16xf32> to vector<1x8x16xf32>
    %cst_113 = arith.constant dense<0.000000e+00> : vector<1xf32>
    %252 = vector.multi_reduction <add>, %251, %cst_113 [1, 2] : vector<1x8x16xf32> to vector<1xf32>
    %253 = vector.shape_cast %252 : vector<1xf32> to vector<1x1x1xf32>
    %254 = vector.extract %253[0, 0, 0] : f32 from vector<1x1x1xf32>
    %255 = vector.shape_cast %158 : vector<8x16xf32> to vector<1x8x16xf32>
    %cst_114 = arith.constant dense<0.000000e+00> : vector<1xf32>
    %256 = vector.multi_reduction <add>, %255, %cst_114 [1, 2] : vector<1x8x16xf32> to vector<1xf32>
    %257 = vector.shape_cast %256 : vector<1xf32> to vector<1x1x1xf32>
    %258 = vector.extract %257[0, 0, 0] : f32 from vector<1x1x1xf32>
    %259 = tpu.iota {dimensions = array<i32: 1>} : vector<1x128xi32>
    %c0_i32_115 = arith.constant 0 : i32
    %260 = vector.broadcast %c0_i32_115 : i32 to vector<1x128xi32>
    %261 = arith.cmpi eq, %259, %260 : vector<1x128xi32>
    %c1_i32_116 = arith.constant 1 : i32
    %262 = vector.broadcast %c1_i32_116 : i32 to vector<1x128xi32>
    %263 = arith.cmpi eq, %259, %262 : vector<1x128xi32>
    %cst_117 = arith.constant 0.000000e+00 : f32
    %264 = vector.broadcast %258 : f32 to vector<1x128xf32>
    %265 = vector.broadcast %cst_117 : f32 to vector<1x128xf32>
    %266 = arith.select %263, %264, %265 : vector<1x128xi1>, vector<1x128xf32>
    %267 = vector.broadcast %254 : f32 to vector<1x128xf32>
    %268 = arith.select %261, %267, %266 : vector<1x128xi1>, vector<1x128xf32>
    %c0_118 = arith.constant 0 : index
    %c0_119 = arith.constant 0 : index
    %c0_120 = arith.constant 0 : index
    %269 = vector.load %arg6[%c0_118, %c0_119, %c0_120] : memref<1x1x128xf32, #tpu.memory_space<vmem>>, vector<1x1x128xf32>
    %270 = vector.shape_cast %269 : vector<1x1x128xf32> to vector<1x128xf32>
    %271 = vector.shape_cast %268 : vector<1x128xf32> to vector<1x1x128xf32>
    tpu.vector_store %arg6[%c0_118, %c0_119, %c0_120], %271 {strides = array<i32>} : memref<1x1x128xf32, #tpu.memory_space<vmem>>, vector<1x1x128xf32>,
    return
  }
  func.func @transform_0(%arg0: i32, %arg1: i32, %arg2: i32, %arg3: memref<24xi32, #tpu.memory_space<smem>>) -> (i32, i32, i32, i32) {
    %c0_i32 = arith.constant 0 : i32
    %c0_i32_0 = arith.constant 0 : i32
    return %arg0, %c0_i32, %arg1, %arg2 : i32, i32, i32, i32
  }
  func.func @transform_1(%arg0: i32, %arg1: i32, %arg2: i32, %arg3: memref<24xi32, #tpu.memory_space<smem>>) -> (i32, i32, i32) {
    %c0_i32 = arith.constant 0 : i32
    return %arg0, %arg1, %arg2 : i32, i32, i32
  }
  func.func @transform_2(%arg0: i32, %arg1: i32, %arg2: i32, %arg3: memref<24xi32, #tpu.memory_space<smem>>) -> (i32, i32, i32) {
    %c2_i32 = arith.constant 2 : i32
    %0 = arith.muli %arg0, %c2_i32 : i32
    %c1_i32 = arith.constant 1 : i32
    %1 = arith.muli %arg1, %c1_i32 : i32
    %2 = arith.addi %0, %1 : i32
    %3 = arith.addi %2, %arg2 : i32
    %c0_i32 = arith.constant 0 : i32
    %c0_i32_0 = arith.constant 0 : i32
    %c0_i32_1 = arith.constant 0 : i32
    return %3, %c0_i32, %c0_i32_0 : i32, i32, i32
  }
}

</mosaic_0001>

<bundles_post_ra>
// kernel: tpu_custom_call.1
= control target key start
LH: loop header
LB: loop body
LE: loop exit
PB: predicated region body
PF: predicated region fallthrough
CT: control target
= control target key end

     0   :  { %s1001_s15 = smov [#allocation3]   ;;  %s1364_s0 = inlined_call_operand.hbm [shape: s32[24], index: 0, kind: input, shape index: {}]   ;;  %s1365_s1 = inlined_call_operand.hbm [shape: f32[2,9,16,16], index: 1, kind: input, shape index: {}]   ;;  %s1366_s2 = inlined_call_operand.hbm [shape: f32[2,16,16], index: 2, kind: input, shape index: {}]   ;;  %s1367_s3 = inlined_call_operand.hbm [shape: f32[4,1,128], index: 3, kind: output, shape index: {}]  }
   0x1   :  { %1372 = sst [smem:[#allocation18_spill]] %s1365_s1  ;;  %s9_s14 = sshll.u32 %s1364_s0, 4  ;;  %s10_s14 = int_to_ptr.hbm [resolvable:$true] %s9_s14 }
   0x2   :  { %12 = dma.hbm_to_smem %s10_s14, 16, %s1001_s15, [#allocation2] }
   0x3   :  { %943 = dma.done.wait [#allocation2], 16 }
   0x4   :  { %944 = vsyncadd [#allocation2], 4294967280 }
   0x5   :  { %15 = sfence }
   0x6   :  { %16 = vsyncpa [#allocation5], 0 }
   0x7   :  { %18 = vsyncpa [#allocation5 + $0x1], 0 }
   0x8   :  { %19 = vsyncpa [#allocation8], 0 }
   0x9   :  { %21 = vsyncpa [#allocation8 + $0x1], 0 }
   0xa   :  { %22 = vsyncpa [#allocation6], 0 }
   0xb   :  { %24 = vsyncpa [#allocation6 + $0x1], 0  ;;  %s1030_s16 = smov 0   ;;  %s1032_s17 = smov 0  }
   0xc   :  { %s1034_s18 = smov 0   ;;  %s1036_s19 = smov 0  }
   0xd   :  { %s1038_s0 = smov 0   ;;  %s1040_s20 = smov 0  }
   0xe   :  { %s1042_s21 = smov 0   ;;  %s1044_s22 = smov 0  }
   0xf   :  { %s1046_s23 = smov 0   ;;  %s1048_s24 = smov 0  }
  0x10   :  { %s1050_s25 = smov 0  }
  0x11 LB: > { %1373 = sst [smem:[#allocation14_spill]] %s991_s23  ;;  %p67_p0 = scmp.ne.s32.totalorder %s979_s20, %s975_s0  ;;  %s999_s25 = sphi %s1050_s25, %s30_s25   ;;  %s995_s24 = sphi %s1048_s24, %s1401_s24   ;;  %s991_s23 = sphi %s1046_s23, %s1400_s23   ;;  %s987_s22 = sphi %s1044_s22, %s1399_s22   ;;  %s983_s21 = sphi %s1042_s21, %s1398_s21   ;;  %s979_s20 = sphi %s1040_s20, %s1407_s20   ;;  %s975_s0 = sphi %s1038_s0, %s1406_s0   ;;  %s971_s19 = sphi %s1036_s19, %s1405_s19   ;;  %s967_s18 = sphi %s1034_s18, %s1404_s18   ;;  %s963_s17 = sphi %s1032_s17, %s1403_s17   ;;  %s959_s16 = sphi %s1030_s16, %s1402_s16  }
  0x12   : > { %1374 = sst [smem:[#allocation15_spill]] %s995_s24  ;;  %p68_p1 = scmp.eq.s32.totalorder %s999_s25, 0 }
  0x13   : > { %p677_p2 = scmp.lt.s32.totalorder %s999_s25, 4  ;;  %s1090_s26 = sand.u32 1, %s979_s20  }
  0x14   : > { %p69_p3 = por %p68_p1, %p67_p0  ;;  %s648_s27 = smul.u32 72, %s1090_s26 }
  0x15   : > { %s649_s28 = smul.u32 18, %s995_s24  ;;  %s1376_s1 = sld [smem:[#allocation18_spill]] }
  0x16   : > { %p1094_p4 = pnand %p677_p2, %p69_p3  ;;  %s163_s4 = scalar_lea.vmem [#allocation4], %s648_s27 }
  0x17   : > { %s168_s30 = sadd.s32 %s991_s23, %s649_s28  ;;  %s173_s5 = sshll.u32 %s163_s4, 4  ;;  %s174_s5 = int_to_ptr.vmem [resolvable:$true] %s173_s5 }
  0x18   : > { %s621_s6 = sshll.u32 %s168_s30, 3  ;;  %s160_s11 = scalar_lea.sflag [#allocation5], %s1090_s26 }
  0x19   : > { %s1002_s12 = smov 256   ;;  %s1003_s13 = smov 128  }
  0x1a   : > { %s1004_s14 = smov 8   ;;  %p625_p5 = scmp.ge.s32.totalorder %s999_s25, 1 }
  0x1b   : > { %s170_s9 = scalar_lea.hbm %s1376_s1, %s621_s6  ;;  %p203_p6 = scmp.lt.s32.totalorder %s999_s25, 5 }
  0x1c   : > { %s171_s10 = sshll.u32 %s170_s9, 4  ;;  %s615_s27 = sadd.s32 4294967295, %s999_s25   ;;  %s172_s10 = int_to_ptr.hbm [resolvable:$true] %s171_s10 }
  0x1d   : > { %669 = dma.hbm_to_vmem [thread:$0]  (!%p1094_p4), %s172_s10, 1152, %s174_s5, %s160_s11, %s1002_s12, %s1003_s13, %s1004_s14  }
  0x1e   : > { %p1107_p7 = pnand %p625_p5, %p203_p6  ;;  %s45_s30 = sadd.s32 1, %s991_s23 }
  0x1f   : > { %p47_p8 = scmp.ge.s32.totalorder %s45_s30, 2  ;;  %s49_s4 = sadd.s32 1, %s995_s24 }
  0x20   : > { %s60_s6 = sadd.s32 1, %s979_s20  ;;  %p73_p9 = scmp.ne.s32.totalorder %s975_s0, %s971_s19 }
  0x21   : > { %s1409_s30 = smov (%p47_p8, %s45_s30), 0  ;;  %s1411_s4 = smov (!%p47_p8, %s49_s4), %s995_s24 }
  0x22   : > { %1378 = sst [smem:[#allocation16_spill]] %s1409_s30  ;;  %s54_s5 = ssub.s32 %s991_s23, %s1409_s30 }
  0x23   : > { %p74_p10 = scmp.eq.s32.totalorder %s615_s27, 0  ;;  %p51_p11 = scmp.ge.s32.totalorder %s1411_s4, 2 }
  0x24   : > { %s617_s7 = sshll.u32 %s995_s24, 1  ;;  %s122_s19 = sadd.s32 1, %s967_s18 }
  0x25   : > { %p1124_p12 = por %p74_p10, %p73_p9  ;;  %s114_s9 = sadd.s32 %s991_s23, %s617_s7 }
  0x26   : > { %s1413_s4 = smov (%p51_p11, %s1411_s4), 0  ;;  %p132_p13 = scmp.ne.s32.totalorder %s967_s18, %s963_s17 }
  0x27   : > { %1380 = sst [smem:[#allocation17_spill]] %s1413_s4  ;;  %s53_s10 = ssub.s32 %s995_s24, %s1413_s4 }
  0x28   : > { %s618_s11 = sshll.u32 %s1413_s4, 1  ;;  %s55_s12 = sor.u32 %s54_s5, %s53_s10 }
  0x29   : > { %s117_s13 = sadd.s32 %s618_s11, %s1409_s30  ;;  %p58_p0 = scmp.eq.s32.totalorder %s55_s12, 0 }
  0x2a   : > { %s119_s14 = ssub.s32 %s114_s9, %s117_s13  ;;  %p133_p2 = scmp.eq.s32.totalorder %s615_s27, 3 }
  0x2b   : > { %p120_p1 = scmp.eq.s32.totalorder %s119_s14, 0  ;;  %p138_p5 = scmp.ne.s32.totalorder %s963_s17, %s959_s16 }
  0x2c   : > { %s1139_s28 = scalar_select %p58_p0, %s979_s20, %s60_s6  }
  0x2d   : > { %s1142_s7 = scalar_select %p120_p1, %s967_s18, %s122_s19  }
  0x2e   : > { %p1144_p3 = por %p133_p2, %p132_p13  ;;  %s1382_s23 = sadd.s32 4294967294, %s999_s25  }
  0x2f   : > { %p139_p6 = scmp.eq.s32.totalorder %s1382_s23, 3  ;;  %s622_s4 = sshll.u32 %s1090_s26, 3 }
  0x30   : > { %s624_s5 = sshll.u32 %s114_s9, 3  ;;  %s187_s12 = scalar_lea.vmem [#allocation7], %s622_s4 }
  0x31   : > { %p1153_p8 = por %p139_p6, %p138_p5  ;;  %s194_s6 = scalar_lea.hbm %s1366_s2, %s624_s5 }
  0x32   : > { %s198_s19 = sshll.u32 %s187_s12, 4  ;;  %s196_s13 = sshll.u32 %s194_s6, 4  ;;  %s199_s19 = int_to_ptr.vmem [resolvable:$true] %s198_s19  ;;  %s197_s13 = int_to_ptr.hbm [resolvable:$true] %s196_s13 }
  0x33   : > { %s184_s14 = scalar_lea.sflag [#allocation8], %s1090_s26  ;;  %207 = sbr.rel (%p1107_p7) target bundleno = 345 (0x159), region = 28 }
  0x34   : > { %672 = dma.hbm_to_vmem [thread:$0]  (!%p1094_p4), %s197_s13, 128, %s199_s19, %s184_s14  }
  0x35   : > { %s209_s23 = sand.u32 (!%p1107_p7), 1, %s975_s0  }
  0x36   : > { %s650_s9 = smul.u32 (!%p1107_p7), 72, %s209_s23  ;;  %s210_s30 = scalar_lea.sflag (!%p1107_p7), [#allocation5], %s209_s23 }
  0x38   : > { %s1166_s24 = scalar_lea.vmem [#allocation4], %s650_s9 }
  0x39   : > { %946 = dma.done.wait (%p1124_p12), %s210_s30, 1152  }
  0x3a   : > { %948 = vsyncadd (%p1124_p12), %s210_s30, 4294966144  ;;  %s626_s4 = sshll.u32 %s209_s23, 3  ;;  %s220_s26 = scalar_lea.sflag [#allocation8], %s209_s23 }
  0x3b   : > { %s223_s29 = scalar_lea.vmem [#allocation7], %s626_s4 }
  0x3c   : > { %950 = dma.done.wait (%p1124_p12), %s220_s26, 128  }
  0x3d   : > { %952 = vsyncadd (%p1124_p12), %s220_s26, 4294967168  ;;  %v1005_v0 = vmov 1.2444445   ;;  %v252_v2 = vld [vmem:[%s223_s29] sm:$0xff]  ;;  %v287_v3 = vld [vmem:[%s1166_s24] sm:$0xff]  ;;  %vm1006_vm7 = vmmov 1  }
  0x3e   : > { %773 = vrcp.f32 %v1005_v0  ;;  %v628_v4 = vld [vmem:[%s1166_s24 + $0x8] sm:$0xff]  ;;  %v629_v7 = vld [vmem:[%s1166_s24 + $0x10] sm:$0xff]  ;;  %v627_v8 = vadd.f32 -2.0, %v252_v2  ;;  %v630_v9 = vld [vmem:[%s1166_s24 + $0x18] sm:$0xff]  ;;  %s636_s19 = sshll.u32 %s983_s21, 3 }
  0x3f   : > { %v290_v6 = vmax.f32 %v287_v3, %v628_v4  ;;  %v631_v12 = vld [vmem:[%s1166_s24 + $0x20] sm:$0xff]  ;;  %v632_v16 = vld [vmem:[%s1166_s24 + $0x28] sm:$0xff]  ;;  %v633_v19 = vld [vmem:[%s1166_s24 + $0x30] sm:$0xff] }
  0x40   : > { %v254_v15 = vmul.f32 8.0, %v627_v8  ;;  %v634_v23 = vld [vmem:[%s1166_s24 + $0x38] sm:$0xff]  ;;  %v635_v26 = vld [vmem:[%s1166_s24 + $0x40] sm:$0xff]  ;;  %s1197_s24 = smul.u32 12, %s987_s22 }
  0x41   : > { %v293_v11 = vmax.f32 %v290_v6, %v629_v7 }
  0x42   : > { %s398_s15 = sadd.s32 1, %s1197_s24  ;;  %s1202_s30 = sadd.s32 4, %s1197_s24 }
  0x43   : > { %v296_v14 = vmax.f32 %v293_v11, %v630_v9  ;;  %s402_s8 = sadd.s32 3, %s1197_s24  ;;  %s1205_s5 = sld [smem:[#allocation3 + %s398_s15]] }
  0x44   : > { %v774_v1 = vpop.eup %773  ;;  %s419_s11 = sadd.s32 1, %s1202_s30  ;;  %s423_s27 = sadd.s32 3, %s1202_s30 }
  0x45   : > { %v256_v5 = vmul.f32 1.2444445, %v774_v1  ;;  %vm260_vm0 = vweird.f32 %v774_v1  ;;  %v299_v18 = vmax.f32 %v296_v14, %v631_v12  ;;  %s1210_s6 = sadd.s32 8, %s1197_s24  ;;  %s1212_s12 = sld [smem:[#allocation3 + %s402_s8]] }
  0x46   : > { %s1215_s13 = sld [smem:[#allocation3 + %s419_s11]]  ;;  %s440_s23 = sadd.s32 1, %s1210_s6 }
  0x47   : > { %v257_v10 = vsub.f32 1.0, %v256_v5  ;;  %v302_v21 = vmax.f32 %v299_v18, %v632_v16  ;;  %v387_v18 = vlaneseq  ;;  %s1217_s14 = sld [smem:[#allocation3 + %s423_s27]]  ;;  %s444_s4 = sadd.s32 3, %s1210_s6 }
  0x48   : > { %s1221_s9 = sld [smem:[#allocation3 + %s1197_s24]]  ;;  %s400_s26 = sadd.s32 2, %s1197_s24 }
  0x49   : > { %v258_v13 = vmul.f32 %v774_v1, %v257_v10  ;;  %v305_v24 = vmax.f32 %v302_v21, %v633_v19  ;;  %s1226_s29 = sld [smem:[#allocation3 + %s1202_s30]]  ;;  %s421_s15 = sadd.s32 2, %s1202_s30 }
  0x4a   : > { %s1229_s8 = sld [smem:[#allocation3 + %s440_s23]] }
  0x4b   : > { %v259_v17 = vadd.f32 %v774_v1, %v258_v13  ;;  %v308_v27 = vmax.f32 %v305_v24, %v634_v23  ;;  %s1232_s11 = sld [smem:[#allocation3 + %s444_s4]] }
  0x4c   : > { %s1234_s24 = sld [smem:[#allocation3 + %s400_s26]] }
  0x4d   : > { %v261_v20 = vsel %vm260_vm0, %v774_v1, %v259_v17  ;;  %v311_v28 = vmax.f32 %v308_v27, %v635_v26  ;;  %s1238_s27 = sld [smem:[#allocation3 + %s421_s15]] }
  0x4e   : > { %v262_v22 = vmul.f32 %v261_v20, %v254_v15  ;;  %s1242_s30 = sld [smem:[#allocation3 + %s1210_s6]] }
  0x4f   : > { %v312_v29 = vsub.f32 %v287_v3, %v311_v28  ;;  %v319_v30 = vsub.f32 %v628_v4, %v311_v28  ;;  %v326_v31 = vsub.f32 %v629_v7, %v311_v28  ;;  %v333_v32 = vsub.f32 %v630_v9, %v311_v28 }
  0x50   : > { %v263_v25 = vadd.f32 1.0, %v262_v22  ;;  %v340_v33 = vsub.f32 %v631_v12, %v311_v28  ;;  %v347_v39 = vsub.f32 %v632_v16, %v311_v28  ;;  %v354_v42 = vsub.f32 %v633_v19, %v311_v28 }
  0x51   : > { %v313_v34 = vmul.f32 1.442695, %v312_v29  ;;  %v320_v35 = vmul.f32 1.442695, %v319_v30  ;;  %v327_v36 = vmul.f32 1.442695, %v326_v31  ;;  %v361_v45 = vsub.f32 %v634_v23, %v311_v28 }
  0x52   : > { %775 = vrsqrt.f32 %v263_v25  ;;  %v334_v38 = vmul.f32 1.442695, %v333_v32  ;;  %v341_v41 = vmul.f32 1.442695, %v340_v33  ;;  %v348_v44 = vmul.f32 1.442695, %v347_v39 }
  0x53   : > { %777 = vpow2.f32 %v313_v34  ;;  %v355_v47 = vmul.f32 1.442695, %v354_v42  ;;  %v368_v48 = vsub.f32 %v635_v26, %v311_v28  ;;  %v362_v52 = vmul.f32 1.442695, %v361_v45 }
  0x54   : > { %779 = vpow2.f32 %v320_v35  ;;  %vm271_vm1 = vcmp.eq.f32.partialorder %v263_v25, inf  ;;  %v274_v57 = vand.u32 2147483648, %v263_v25  ;;  %vm273_vm2 = vcmp.eq.f32.partialorder %v263_v25, 0.0 }
  0x55   : > { %781 = vpow2.f32 %v327_v36  ;;  %v369_v58 = vmul.f32 1.442695, %v368_v48  ;;  %v388_v26 = vshrl.u32 %v387_v18, 7  ;;  %v389_v28 = vstv %s636_s19  ;;  %s442_s19 = sadd.s32 2, %s1210_s6  ;;  %s639_s6 = sshll.u32 %s987_s22, 1 }
  0x56   : > { %783 = vpow2.f32 %v334_v38  ;;  %v404_v35 = vstv %s1205_s5  ;;  %v406_v38 = vstv %s1212_s12  ;;  %v430_v48 = vstv %s1226_s29  ;;  %s1261_s5 = sld [smem:[#allocation3 + %s442_s19]]  ;;  %s247_s12 = sand.u32 1, %s963_s17  }
  0x57   : > { %785 = vpow2.f32 %v341_v41  ;;  %v390_v33 = vadd.s32 %v389_v28, %v388_v26  ;;  %v427_v41 = vstv %s1217_s14  ;;  %s248_s4 = scalar_lea.vmem [#allocation9], %s247_s12 }
  0x58   : > { %v776_v37 = vpop.eup %775  ;;  %787 = vpow2.f32 %v348_v44  ;;  %s501_s26 = sshll.u32 %s248_s4, 4  ;;  %s502_s26 = int_to_ptr.vmem [resolvable:$true] %s501_s26 }
  0x59   : > { %v265_v40 = vmul.f32 %v776_v37, %v263_v25  ;;  %v778_v49 = vpop.eup %777  ;;  %789 = vpow2.f32 %v355_v47  ;;  %v409_v47 = vstv %s1221_s9 }
  0x5a   : > { %v780_v51 = vpop.eup %779  ;;  %791 = vpow2.f32 %v362_v52 }
  0x5b   : > { %v266_v43 = vmul.f32 %v776_v37, %v265_v40  ;;  %v782_v53 = vpop.eup %781  ;;  %v322_v55 = vadd.f32 %v780_v51, %v778_v49  ;;  %793 = vpow2.f32 %v369_v58  ;;  %v425_v40 = vstv %s1215_s13  ;;  %s495_s13 = sadd.s32 %s983_s21, %s639_s6  ;;  %s488_s21 = scalar_lea.sflag [#allocation6], %s247_s12 }
  0x5c   : > { %v784_v56 = vpop.eup %783  ;;  %s499_s9 = scalar_lea.hbm %s1367_s3, %s495_s13 }
  0x5d   : > { %v267_v46 = vmul.f32 0.5, %v266_v43  ;;  %v329_v60 = vadd.f32 %v782_v53, %v322_v55  ;;  %v786_v61 = vpop.eup %785  ;;  %v1248_v43 = vand.u32 127, %v387_v18  ;;  %s503_s15 = sshll.u32 %s499_s9, 4  ;;  %s504_s15 = int_to_ptr.hbm [resolvable:$true] %s503_s15 }
  0x5e   : > { %v1185_v0 = vpop.eup %787  ;;  %s885_s22 = sshra.s32 %s504_s15, 4  ;;  %s886_s22 = int_to_ptr.hbm [resolvable:$true] %s885_s22 }
  0x5f   : > { %v268_v50 = vsub.f32 1.5, %v267_v46  ;;  %v336_v63 = vadd.f32 %v784_v56, %v329_v60  ;;  %v1187_v4 = vpop.eup %789  ;;  %p892_p10 = scmp.lt.s32.totalorder %s886_s22, %s1367_s3 }
  0x60   : > { %v1190_v7 = vpop.eup %791 }
  0x61   : > { %v269_v54 = vmul.f32 %v776_v37, %v268_v50  ;;  %v343_v3 = vadd.f32 %v786_v61, %v336_v63  ;;  %v1193_v10 = vpop.eup %793 }
  0x63   : > { %v270_v59 = vmul.f32 %v269_v54, %v263_v25  ;;  %v350_v6 = vadd.f32 %v1185_v0, %v343_v3  ;;  %v448_v54 = vstv %s1232_s11  ;;  %s887_s11 = scalar_lea.hbm %s886_s22, 1 }
  0x64   : > { %p888_p4 = scmp.ne.s32.totalorder %s886_s22, %s887_s11 }
  0x65   : > { %v272_v62 = vsel %vm271_vm1, %v263_v25, %v270_v59  ;;  %v357_v9 = vadd.f32 %v1187_v4, %v350_v6 }
  0x66   : > { %v275_v1 = vsel %vm273_vm2, %v274_v57, %v272_v62  ;;  %v433_v57 = vstv %s1238_s27  ;;  %p889_p7 = pnand %p888_p4, %p1144_p3 }
  0x67   : > { %v276_v2 = vmul.f32 0.5, %v275_v1  ;;  %v364_v11 = vadd.f32 %v1190_v7, %v357_v9 }
  0x68   : > { %p890_p9 = pneg %p889_p7 }
  0x69   : > { %v277_v5 = vadd.f32 -0.5, %v276_v2  ;;  %v371_v12 = vadd.f32 %v1193_v10, %v364_v11 }
  0x6b   : > { %v278_v8 = vand.u32 2147483647, %v277_v5  ;;  %vm280_vm3 = vcmp.lt.f32.partialorder %v277_v5, 0.0  ;;  %vm281_vm4 = vcmp.gt.f32.partialorder %v277_v5, 8.0  ;;  %795 = vrcp.f32 %v371_v12 }
  0x6c   : > { %vm282_vm5 = vmor %vm280_vm3, %vm281_vm4  ;;  %vm1250_vm4 = vcmp.ge.s32.totalorder %v390_v33, %v404_v35 }
  0x6d   : > { %vm279_vm6 = vcmp.lt.f32.partialorder %v278_v8, inf }
  0x6e   : > { %vm283_vm8 = vmxor %vm279_vm6, %vm1006_vm7  ;;  %vm1263_vm6 = vcmp.ge.s32.totalorder %v390_v33, %v425_v40  ;;  %vm1267_vm7 = vcmp.lt.s32.totalorder %v390_v33, %v427_v41 }
  0x6f   : > { %vm284_vm9 = vmor %vm282_vm5, %vm283_vm8  ;;  %vm1255_vm5 = vcmp.lt.s32.totalorder %v390_v33, %v406_v38 }
  0x70   : > { %v285_v13 = vsel %vm284_vm9, 8.0, %v277_v5  ;;  %vm408_vm8 = vmand %vm1250_vm4, %vm1255_vm5  ;;  %vm410_vm9 = vcmp.ge.s32.totalorder %v1248_v43, %v409_v47 }
  0x71   : > { %vm651_vm10 = vcmp.lt.s32.totalorder %v285_v13, 0  ;;  %v652_v14 = vceil.f32 %v285_v13  ;;  %v653_v15 = vfloor.f32 %v285_v13  ;;  %v796_v23 = vpop.eup %795 }
  0x72   : > { %v376_v30 = vmul.f32 %v796_v23, %v371_v12 }
  0x73   : > { %v654_v16 = vsel %vm651_vm10, %v652_v14, %v653_v15  ;;  %vm429_vm10 = vmand %vm1263_vm6, %vm1267_vm7 }
  0x74   : > { %v655_v17 = vcvt.f32.s32 %v654_v16  ;;  %v377_v37 = vsub.f32 2.0, %v376_v30 }
  0x76   : > { %vm316_vm11 = vcmp.eq.s32.totalorder %v655_v17, 0  ;;  %vm323_vm12 = vcmp.eq.s32.totalorder %v655_v17, 1  ;;  %vm330_vm13 = vcmp.eq.s32.totalorder %v655_v17, 2  ;;  %vm337_vm14 = vcmp.eq.s32.totalorder %v655_v17, 3 }
  0x77   : > { %v317_v19 = vsel %vm316_vm11, %v778_v49, 0.0  ;;  %v324_v20 = vsel %vm323_vm12, %v780_v51, 0.0  ;;  %v331_v21 = vsel %vm330_vm13, %v782_v53, 0.0  ;;  %vm344_vm15 = vcmp.eq.s32.totalorder %v655_v17, 4 }
  0x78   : > { %v325_v22 = vadd.f32 %v324_v20, %v317_v19  ;;  %v338_v24 = vsel %vm337_vm14, %v784_v56, 0.0  ;;  %vm351_vm0 = vcmp.eq.s32.totalorder %v655_v17, 5  ;;  %v345_v27 = vsel %vm344_vm15, %v786_v61, 0.0  ;;  %vm1294_vm14 = vmand %vm408_vm8, %vm410_vm9 }
  0x79   : > { %vm358_vm1 = vcmp.eq.s32.totalorder %v655_v17, 6  ;;  %v352_v31 = vsel %vm351_vm0, %v1185_v0, 0.0  ;;  %vm365_vm2 = vcmp.eq.s32.totalorder %v655_v17, 7  ;;  %vm372_vm3 = vcmp.eq.s32.totalorder %v655_v17, 8 }
  0x7a   : > { %v332_v25 = vadd.f32 %v331_v21, %v325_v22  ;;  %v359_v34 = vsel %vm358_vm1, %v1187_v4, 0.0  ;;  %v366_v39 = vsel %vm365_vm2, %v1190_v7, 0.0  ;;  %v373_v45 = vsel %vm372_vm3, %v1193_v10, 0.0 }
  0x7b   : > { %v378_v50 = vmul.f32 %v796_v23, %v377_v37  ;;  %v446_v53 = vstv %s1229_s8  ;;  %v412_v56 = vstv %s1234_s24  ;;  %vm431_vm11 = vcmp.ge.s32.totalorder %v1248_v43, %v430_v48 }
  0x7c   : > { %v339_v29 = vadd.f32 %v338_v24, %v332_v25  ;;  %vm1285_vm12 = vcmp.ge.s32.totalorder %v390_v33, %v446_v53  ;;  %vm1289_vm13 = vcmp.lt.s32.totalorder %v390_v33, %v448_v54  ;;  %v451_v61 = vstv %s1242_s30  ;;  %vm432_vm0 = vmand %vm429_vm10, %vm431_vm11  ;;  %s891_s30 = scalar_lea.hbm %s1367_s3, 4 }
  0x7d   : > { %vm413_vm15 = vcmp.lt.s32.totalorder %v1248_v43, %v412_v56  ;;  %vm434_vm1 = vcmp.lt.s32.totalorder %v1248_v43, %v433_v57  ;;  %vm450_vm2 = vmand %vm1285_vm12, %vm1289_vm13  ;;  %vm452_vm3 = vcmp.ge.s32.totalorder %v1248_v43, %v451_v61  ;;  %v454_v0 = vstv %s1261_s5  ;;  %p893_p11 = scmp.lt.s32.totalorder %s891_s30, %s887_s11 }
  0x7e   : > { %v346_v32 = vadd.f32 %v345_v27, %v339_v29  ;;  %vm414_vm4 = vmand %vm1294_vm14, %vm413_vm15  ;;  %vm455_vm7 = vcmp.lt.s32.totalorder %v1248_v43, %v454_v0  ;;  %vm459_vm11 = vcmask 130048   ;;  %vm481_vm12 = vcmp.eq.s32.totalorder %v1248_v43, 1 }
  0x7f   : > { %vm435_vm5 = vmand %vm432_vm0, %vm434_vm1  ;;  %vm480_vm13 = vcmp.eq.s32.totalorder %v1248_v43, 0  ;;  %p894_p12 = por %p893_p11, %p892_p10 }
  0x80   : > { %v353_v36 = vadd.f32 %v352_v31, %v346_v32  ;;  %vm453_vm6 = vmand %vm450_vm2, %vm452_vm3 }
  0x81   : > { %vm436_vm8 = vmor %vm414_vm4, %vm435_vm5  ;;  %p895_p13 = pnand %p894_p12, %p890_p9 }
  0x82   : > { %v360_v42 = vadd.f32 %v359_v34, %v353_v36  ;;  %vm456_vm9 = vmand %vm453_vm6, %vm455_vm7 }
  0x83   : > { %vm457_vm10 = vmor %vm436_vm8, %vm456_vm9 }
  0x84   : > { %v367_v49 = vadd.f32 %v366_v39, %v360_v42 }
  0x86   : > { %v374_v55 = vadd.f32 %v373_v45, %v367_v49 }
  0x88   : > { %v379_v58 = vmul.f32 %v378_v50, %v374_v55 }
  0x8a   : > { %v380_v63 = vadd.f32 1e-08, %v379_v58 }
  0x8c   : > { %797 = vlog2.f32 %v380_v63  ;;  %v381_v1 = vsub.f32 1.0, %v380_v63 }
  0x8e   : > { %v382_v2 = vmul.f32 %v381_v1, %v381_v1 }
  0x92   : > { %v798_v3 = vpop.eup %797 }
  0x93   : > { %v384_v4 = vmul.f32 0.6931472, %v798_v3 }
  0x95   : > { %v385_v5 = vmul.f32 %v384_v4, %v382_v2 }
  0x97   : > { %v458_v6 = vsel %vm457_vm10, %v385_v5, 0.0  ;;  %v470_v8 = vsel %vm459_vm11, %v385_v5, 0.0 }
  0x98   : > { %v460_v7 = vsel %vm459_vm11, %v458_v6, 0.0 }
  0x99   : > { %461 = vadd.xlane.f32.xlu0 %v460_v7 }
  0xa1   : > { %471 = vadd.xlane.f32.xlu0 %v470_v8 }
 0x10c   : > { %v462_v9 = vpop.xlane.xlu0 %461 }
 0x10d   : > { %v463_v10 = vrot.slane %v462_v9, 4 }
 0x10f   : > { %v464_v11 = vadd.f32 %v463_v10, %v462_v9 }
 0x111   : > { %v465_v12 = vrot.slane %v464_v11, 2 }
 0x113   : > { %v466_v13 = vadd.f32 %v465_v12, %v464_v11 }
 0x114   : > { %v472_v14 = vpop.xlane.xlu0 %471 }
 0x115   : > { %v473_v15 = vrot.slane %v472_v14, 4  ;;  %v467_v16 = vrot.slane %v466_v13, 1 }
 0x117   : > { %v474_v17 = vadd.f32 %v473_v15, %v472_v14  ;;  %v468_v18 = vadd.f32 %v467_v16, %v466_v13 }
 0x119   : > { %v475_v19 = vrot.slane %v474_v17, 2  ;;  %656 = vpush %v468_v18 }
 0x11b   : > { %v476_v20 = vadd.f32 %v475_v19, %v474_v17 }
 0x11d   : > { %v477_v21 = vrot.slane %v476_v20, 1 }
 0x11f   : > { %v478_v22 = vadd.f32 %v477_v21, %v476_v20 }
 0x121   : > { %658 = vpush %v478_v22 }
 0x14a   : > { %s657_s29 = spop %656 }
 0x14b   : > { %v484_v24 = vstv %s657_s29 }
 0x152   : > { %s659_s8 = spop %658 }
 0x153   : > { %v482_v23 = vstv %s659_s8 }
 0x154   : > { %v483_v25 = vsel %vm481_vm12, %v482_v23, 0.0 }
 0x155   : > { %v485_v26 = vsel %vm480_vm13, %v484_v24, %v483_v25 }
 0x156   : > { %486 = vst [vmem:[%s248_s4] sm:$0x1] %v485_v26 }
 0x157   : > { %898 = shalt.err (!%p895_p13)
}
 0x158   : > { %664 = dma.vmem_to_hbm [thread:$0]  (%p1144_p3), %s502_s26, 16, %s504_s15, %s488_s21  }
 0x159 PF: > { %p678_p0 = scmp.ge.s32.totalorder %s999_s25, 2  ;;  %s515_s6 = sand.u32 1, %s959_s16  }
 0x15a   : > { %s516_s12 = scalar_lea.sflag [#allocation6], %s515_s6 }
 0x15b   : > { %p674_p1 = pnand %p678_p0, %p1153_p8 }
 0x15d   : > { %p675_p2 = pneg %p674_p1 }
 0x15f   : > { %954 = dma.done.wait (%p675_p2), %s516_s12, 16  }
 0x160   : > { %956 = vsyncadd (%p675_p2), %s516_s12, 4294967280  ;;  %s30_s25 = sadd.s32 1, %s999_s25   ;;  %s1398_s21 = sld [smem:[#allocation14_spill]] }
 0x161   : > { %p27_p5 = scmp.ge.s32.totalorder %s30_s25, 6   ;;  %s1399_s22 = sld [smem:[#allocation15_spill]] }
 0x162   : > { %s1400_s23 = sld [smem:[#allocation16_spill]]  ;;  %s1402_s16 = smov %s963_s17 }
 0x163   : > { %s1401_s24 = sld [smem:[#allocation17_spill]]  ;;  %s1403_s17 = smov %s967_s18 }
 0x164   : > { %s1404_s18 = smov %s1142_s7  ;;  %s1405_s19 = smov %s975_s0 }
 0x165   : > { %s1406_s0 = smov %s979_s20  ;;  %s1407_s20 = smov %s1139_s28 }
 0x166   :  { %29 = sbr.rel (!%p27_p5) target bundleno = 17 (0x11), region = 94 }
 0x16b   :  { %521 = vsyncpa [#allocation5], 1 }
 0x16c   :  { %523 = vsyncpa [#allocation5 + $0x1], 1 }
 0x16d   :  { %524 = vsyncpa [#allocation8], 1 }
 0x16e   :  { %526 = vsyncpa [#allocation8 + $0x1], 1 }
 0x16f   :  { %527 = vsyncpa [#allocation6], 1 }
 0x170   :  { %529 = vsyncpa [#allocation6 + $0x1], 1 }

</bundles_post_ra>
